<compile_context>
chip_gen: v5e
topology: v5e:2x2
jax: 0.10.0
libtpu: 0.0.40
codegen_flags: <defaults>
</compile_context>

<pallas_src>
import jax
import jax.numpy as jnp
from jax import lax
from jax.experimental import pallas as pl
from jax.experimental.pallas import tpu as pltpu

LN_EPS = 1e-5  # nn.LayerNorm default


def _layernorm(x, gamma, beta):
    # Two-pass (numerically safe) layernorm, statistics in f32.
    m = jnp.mean(x, axis=-1, keepdims=True)
    c = x - m
    var = jnp.mean(c * c, axis=-1, keepdims=True)
    return c * lax.rsqrt(var + LN_EPS) * gamma + beta


def encoder_kernel(x_ref, w_ref, p_ref, o_ref):
    # x_ref: (TM, D) row tile.  w_ref: (D, D) weight (in, out), resident.
    # p_ref: (8, D) packed params: [fc_bias, g1, b1, g2, b2, 0, 0, 0].
    x = x_ref[...].astype(jnp.float32)               # (TM, D)
    p = p_ref[...].astype(jnp.float32)               # (8, D)

    b_fc = p[0:1, :]
    g1, b1 = p[1:2, :], p[2:3, :]
    g2, b2 = p[3:4, :], p[4:5, :]

    # ---- norm1 ----
    h = _layernorm(x, g1, b1)                        # (TM, D) f32

    # ---- fc (Linear D -> D): 2-D MXU matmul in the weight's dtype,
    #      f32 accumulation ----
    w = w_ref[...]                                   # no per-step upcast
    y = jnp.dot(h.astype(w.dtype), w, preferred_element_type=jnp.float32)

    # ---- bias + residual add ----
    y = y + b_fc + h

    # ---- norm2 ----
    o_ref[...] = _layernorm(y, g2, b2).astype(o_ref.dtype)


def _round_up(v, m):
    return ((v + m - 1) // m) * m


def _pick_row_tile(rows, dtype, max_tm):
    min_tm = 16 if jnp.dtype(dtype) == jnp.dtype(jnp.bfloat16) else 8
    max_tm = max(min_tm, (max_tm // min_tm) * min_tm)
    if rows <= 512:
        # Small input: a single block -> zero per-step overhead.
        return min(max(_round_up(rows, min_tm), min_tm), max_tm)
    # Large input: biggest tile (<= 1024) that leaves >= 2 pipeline steps
    # (on realistic sizes this yields many steps, feeding both v7x cores).
    for tm in (1024, 512, 256, 128, 64, 32, 16, 8):
        if min_tm <= tm <= max_tm and rows >= 2 * tm:
            return tm
    return min_tm


def encoder_forward(x, w_fc, b_fc, g1, b1, g2, b2, *, row_tile=None,
                    matmul_dtype=None):
    B, S, D = x.shape
    R = B * S
    xr = x.reshape(R, D)

    # Optional fast MXU path (v6e/v7x): cast the weight once here; the kernel
    # casts activations to w.dtype and accumulates in f32.
    w = w_fc if matmul_dtype is None else w_fc.astype(matmul_dtype)

    # Pack the five per-feature vectors into one resident (8, D) block.
    zeros = jnp.zeros((D,), jnp.float32)
    params = jnp.stack(
        [b_fc.astype(jnp.float32), g1.astype(jnp.float32),
         b1.astype(jnp.float32), g2.astype(jnp.float32),
         b2.astype(jnp.float32), zeros, zeros, zeros], axis=0)      # (8, D)

    itemsize = jnp.dtype(x.dtype).itemsize
    w_bytes = w.size * jnp.dtype(w.dtype).itemsize
    param_bytes = 8 * D * 4

    # Generation-aware VMEM ceiling (~48 MiB on v7x, ~96 MiB on v5e/v6e).
    try:
        vmem_cap = int(pltpu.get_tpu_info().vmem_capacity_bytes)
    except Exception:
        vmem_cap = 64 * 1024 * 1024  # conservative (v7x per-TC)
    vmem_ceiling = (vmem_cap * 3) // 4

    # Max row tile such that weight + params + double-buffered in/out tiles fit.
    tile_budget = vmem_ceiling - w_bytes - 2 * param_bytes
    max_tm = max(8, min(1024, tile_budget // max(1, 4 * D * itemsize)))

    tm = row_tile if row_tile is not None else _pick_row_tile(R, x.dtype, max_tm)
    grid = (pl.cdiv(R, tm),)  # partial last block handled by Pallas (row-wise ops)

    bytes_accessed = int(2 * R * D * itemsize + w_bytes + param_bytes)
    cost = pl.CostEstimate(
        flops=2 * R * D * D,
        transcendentals=2 * R,            # two rsqrt's per row
        bytes_accessed=bytes_accessed,
    )

    # Conservative (double-buffered-everything) need; actual use is lower when
    # the weight/params are single-buffered.
    vmem_needed = 2 * w_bytes + 2 * 2 * tm * D * itemsize + 2 * param_bytes
    vmem_limit = int(min(max(2 * vmem_needed, 16 * 1024 * 1024), vmem_ceiling))

    def _call(single_buffer_consts):
        const_kw = {}
        if single_buffer_consts:
            # Constant index_map => never re-fetched; one buffer is enough.
            const_kw = dict(pipeline_mode=pl.Buffered(1))
        w_spec = pl.BlockSpec((D, D), lambda i: (0, 0), **const_kw)
        p_spec = pl.BlockSpec((8, D), lambda i: (0, 0), **const_kw)
        return pl.pallas_call(
            encoder_kernel,
            out_shape=jax.ShapeDtypeStruct((R, D), x.dtype),
            grid_spec=pltpu.PrefetchScalarGridSpec(
                num_scalar_prefetch=0,
                grid=grid,
                in_specs=[
                    pl.BlockSpec((tm, D), lambda i: (i, 0)),   # x row tile
                    w_spec,                                    # fc weight (resident)
                    p_spec,                                    # packed params (resident)
                ],
                out_specs=pl.BlockSpec((tm, D), lambda i: (i, 0)),
            ),
            compiler_params=pltpu.CompilerParams(
                dimension_semantics=("parallel",),
                vmem_limit_bytes=vmem_limit),
            cost_estimate=cost,
        )(xr, w, params)

    try:
        out = _call(True)
    except Exception:
        # Older jax without pipeline_mode / Buffered(1) support: default
        # double-buffering of the resident blocks.
        out = _call(False)

    return out.reshape(B, S, D)


def encoder_reference(x, w_fc, b_fc, g1, b1, g2, b2):
    xf = x.astype(jnp.float32)
    mean = jnp.mean(xf, axis=-1, keepdims=True)
    var = jnp.mean(jnp.square(xf - mean), axis=-1, keepdims=True)
    h = (xf - mean) * lax.rsqrt(var + LN_EPS) * g1 + b1
    y = h @ w_fc.astype(jnp.float32) + b_fc
    y = y + h
    mean2 = jnp.mean(y, axis=-1, keepdims=True)
    var2 = jnp.mean(jnp.square(y - mean2), axis=-1, keepdims=True)
    return ((y - mean2) * lax.rsqrt(var2 + LN_EPS) * g2 + b2).astype(x.dtype)


if __name__ == "__main__":
    # Small shapes: batch=2, seq=8, model dim D=128 (lane-dense: multiple of 128).
    B, S, D = 2, 8, 128

    key = jax.random.PRNGKey(0)
    kx, kw, kb = jax.random.split(key, 3)

    x = jax.random.normal(kx, (B, S, D), dtype=jnp.float32)

    # Deterministic parameter init (synthetic, no checkpoint load).
    w_fc = jax.random.normal(kw, (D, D), dtype=jnp.float32) * (1.0 / jnp.sqrt(D))
    b_fc = jax.random.normal(kb, (D,), dtype=jnp.float32) * 0.01
    g1 = jnp.ones((D,), jnp.float32)
    b1 = jnp.zeros((D,), jnp.float32)
    g2 = jnp.ones((D,), jnp.float32)
    b2 = jnp.zeros((D,), jnp.float32)

    ref = encoder_reference(x, w_fc, b_fc, g1, b1, g2, b2)

    # Exact-dtype (f32 MXU) path: strict tolerance.
    out = jax.block_until_ready(encoder_forward(x, w_fc, b_fc, g1, b1, g2, b2))
    assert out.shape == ref.shape, f"shape mismatch {out.shape} vs {ref.shape}"
    assert jnp.allclose(out, ref, atol=1e-4, rtol=1e-4), "mismatch vs reference (f32 path)"

    # bf16 MXU path (v6e/v7x fast path; f32 accumulation): looser tolerance.
    out_bf16 = jax.block_until_ready(
        encoder_forward(x, w_fc, b_fc, g1, b1, g2, b2, matmul_dtype=jnp.bfloat16))
    assert jnp.allclose(out_bf16, ref, atol=3e-2, rtol=3e-2), "mismatch vs reference (bf16 path)"

    print("KERNEL_OK")
</pallas_src>

<mosaic_0001>
module attributes {stable_mosaic.version = 11 : i64} {
  func.func @encoder_kernel(%arg0: i32, %arg1: memref<16x128xf32, #tpu.memory_space<vmem>>, %arg2: memref<128x128xf32, #tpu.memory_space<vmem>>, %arg3: memref<8x128xf32, #tpu.memory_space<vmem>>, %arg4: memref<16x128xf32, #tpu.memory_space<vmem>>) attributes {dimension_semantics = [#tpu.dimension_semantics<parallel>], iteration_bounds = array<i64: 1>, scalar_prefetch = 0 : i64, scratch_operands = 0 : i64, tpu.core_type = #tpu.core_type<tc>, window_params = [{transform_indices = @transform_0, window_bounds = array<i64: 16, 128>}, {pipeline_mode = #tpu.pipeline_mode<synchronous>, transform_indices = @transform_1, window_bounds = array<i64: 128, 128>}, {pipeline_mode = #tpu.pipeline_mode<synchronous>, transform_indices = @transform_2, window_bounds = array<i64: 8, 128>}, {transform_indices = @transform_3, window_bounds = array<i64: 16, 128>}]} {
    %c0 = arith.constant 0 : index
    %c0_0 = arith.constant 0 : index
    %0 = vector.load %arg1[%c0, %c0_0] : memref<16x128xf32, #tpu.memory_space<vmem>>, vector<16x128xf32>
    %c0_1 = arith.constant 0 : index
    %c0_2 = arith.constant 0 : index
    %1 = vector.load %arg3[%c0_1, %c0_2] : memref<8x128xf32, #tpu.memory_space<vmem>>, vector<8x128xf32>
    %2 = vector.extract_strided_slice %1 {offsets = [0, 0], sizes = [1, 128], strides = [1, 1]} : vector<8x128xf32> to vector<1x128xf32>
    %3 = vector.extract_strided_slice %1 {offsets = [1, 0], sizes = [1, 128], strides = [1, 1]} : vector<8x128xf32> to vector<1x128xf32>
    %4 = vector.extract_strided_slice %1 {offsets = [2, 0], sizes = [1, 128], strides = [1, 1]} : vector<8x128xf32> to vector<1x128xf32>
    %5 = vector.extract_strided_slice %1 {offsets = [3, 0], sizes = [1, 128], strides = [1, 1]} : vector<8x128xf32> to vector<1x128xf32>
    %6 = vector.extract_strided_slice %1 {offsets = [4, 0], sizes = [1, 128], strides = [1, 1]} : vector<8x128xf32> to vector<1x128xf32>
    %cst = arith.constant dense<0.000000e+00> : vector<16xf32>
    %7 = vector.multi_reduction <add>, %0, %cst [1] : vector<16x128xf32> to vector<16xf32>
    %8 = vector.shape_cast %7 : vector<16xf32> to vector<16x1xf32>
    %cst_3 = arith.constant 1.280000e+02 : f32
    %9 = vector.broadcast %cst_3 : f32 to vector<16x1xf32>
    %10 = arith.divf %8, %9 : vector<16x1xf32>
    %11 = vector.broadcast %10 : vector<16x1xf32> to vector<16x128xf32>
    %12 = arith.subf %0, %11 : vector<16x128xf32>
    %13 = arith.mulf %12, %12 : vector<16x128xf32>
    %cst_4 = arith.constant dense<0.000000e+00> : vector<16xf32>
    %14 = vector.multi_reduction <add>, %13, %cst_4 [1] : vector<16x128xf32> to vector<16xf32>
    %15 = vector.shape_cast %14 : vector<16xf32> to vector<16x1xf32>
    %cst_5 = arith.constant 1.280000e+02 : f32
    %16 = vector.broadcast %cst_5 : f32 to vector<16x1xf32>
    %17 = arith.divf %15, %16 : vector<16x1xf32>
    %cst_6 = arith.constant 9.99999974E-6 : f32
    %18 = vector.broadcast %cst_6 : f32 to vector<16x1xf32>
    %19 = arith.addf %17, %18 : vector<16x1xf32>
    %20 = math.rsqrt %19 : vector<16x1xf32>
    %21 = vector.broadcast %20 : vector<16x1xf32> to vector<16x128xf32>
    %22 = arith.mulf %12, %21 : vector<16x128xf32>
    %23 = vector.broadcast %3 : vector<1x128xf32> to vector<16x128xf32>
    %24 = arith.mulf %22, %23 : vector<16x128xf32>
    %25 = vector.broadcast %4 : vector<1x128xf32> to vector<16x128xf32>
    %26 = arith.addf %24, %25 : vector<16x128xf32>
    %c0_7 = arith.constant 0 : index
    %c0_8 = arith.constant 0 : index
    %27 = vector.load %arg2[%c0_7, %c0_8] : memref<128x128xf32, #tpu.memory_space<vmem>>, vector<128x128xf32>
    %cst_9 = arith.constant dense<0.000000e+00> : vector<16x128xf32>
    %28 = tpu.matmul %26, %27, %cst_9 {dimension_numbers = #tpu.dot_dimension_numbers<[1], [0], [0], [1], [0, 0, 1, 1], [], []>} : vector<16x128xf32>, vector<128x128xf32>, vector<16x128xf32> -> vector<16x128xf32>
    %29 = vector.broadcast %2 : vector<1x128xf32> to vector<16x128xf32>
    %30 = arith.addf %28, %29 : vector<16x128xf32>
    %31 = arith.addf %30, %26 : vector<16x128xf32>
    %cst_10 = arith.constant dense<0.000000e+00> : vector<16xf32>
    %32 = vector.multi_reduction <add>, %31, %cst_10 [1] : vector<16x128xf32> to vector<16xf32>
    %33 = vector.shape_cast %32 : vector<16xf32> to vector<16x1xf32>
    %cst_11 = arith.constant 1.280000e+02 : f32
    %34 = vector.broadcast %cst_11 : f32 to vector<16x1xf32>
    %35 = arith.divf %33, %34 : vector<16x1xf32>
    %36 = vector.broadcast %35 : vector<16x1xf32> to vector<16x128xf32>
    %37 = arith.subf %31, %36 : vector<16x128xf32>
    %38 = arith.mulf %37, %37 : vector<16x128xf32>
    %cst_12 = arith.constant dense<0.000000e+00> : vector<16xf32>
    %39 = vector.multi_reduction <add>, %38, %cst_12 [1] : vector<16x128xf32> to vector<16xf32>
    %40 = vector.shape_cast %39 : vector<16xf32> to vector<16x1xf32>
    %cst_13 = arith.constant 1.280000e+02 : f32
    %41 = vector.broadcast %cst_13 : f32 to vector<16x1xf32>
    %42 = arith.divf %40, %41 : vector<16x1xf32>
    %cst_14 = arith.constant 9.99999974E-6 : f32
    %43 = vector.broadcast %cst_14 : f32 to vector<16x1xf32>
    %44 = arith.addf %42, %43 : vector<16x1xf32>
    %45 = math.rsqrt %44 : vector<16x1xf32>
    %46 = vector.broadcast %45 : vector<16x1xf32> to vector<16x128xf32>
    %47 = arith.mulf %37, %46 : vector<16x128xf32>
    %48 = vector.broadcast %5 : vector<1x128xf32> to vector<16x128xf32>
    %49 = arith.mulf %47, %48 : vector<16x128xf32>
    %50 = vector.broadcast %6 : vector<1x128xf32> to vector<16x128xf32>
    %51 = arith.addf %49, %50 : vector<16x128xf32>
    %c0_15 = arith.constant 0 : index
    %c0_16 = arith.constant 0 : index
    %52 = vector.load %arg4[%c0_15, %c0_16] : memref<16x128xf32, #tpu.memory_space<vmem>>, vector<16x128xf32>
    tpu.vector_store %arg4[%c0_15, %c0_16], %51 {strides = array<i32>} : memref<16x128xf32, #tpu.memory_space<vmem>>, vector<16x128xf32>,
    return
  }
  func.func @transform_0(%arg0: i32) -> (i32, i32) {
    %c0_i32 = arith.constant 0 : i32
    %c0_i32_0 = arith.constant 0 : i32
    return %arg0, %c0_i32 : i32, i32
  }
  func.func @transform_1(%arg0: i32) -> (i32, i32) {
    %c0_i32 = arith.constant 0 : i32
    %c0_i32_0 = arith.constant 0 : i32
    %c0_i32_1 = arith.constant 0 : i32
    return %c0_i32, %c0_i32_0 : i32, i32
  }
  func.func @transform_2(%arg0: i32) -> (i32, i32) {
    %c0_i32 = arith.constant 0 : i32
    %c0_i32_0 = arith.constant 0 : i32
    %c0_i32_1 = arith.constant 0 : i32
    return %c0_i32, %c0_i32_0 : i32, i32
  }
  func.func @transform_3(%arg0: i32) -> (i32, i32) {
    %c0_i32 = arith.constant 0 : i32
    %c0_i32_0 = arith.constant 0 : i32
    return %arg0, %c0_i32 : i32, i32
  }
}

module attributes {stable_mosaic.version = 11 : i64} {
  func.func @encoder_kernel(%arg0: i32, %arg1: memref<16x128xf32, #tpu.memory_space<vmem>>, %arg2: memref<128x128xf32, #tpu.memory_space<vmem>>, %arg3: memref<8x128xf32, #tpu.memory_space<vmem>>, %arg4: memref<16x128xf32, #tpu.memory_space<vmem>>) attributes {dimension_semantics = [#tpu.dimension_semantics<parallel>], iteration_bounds = array<i64: 1>, scalar_prefetch = 0 : i64, scratch_operands = 0 : i64, tpu.core_type = #tpu.core_type<tc>, window_params = [{transform_indices = @transform_0, window_bounds = array<i64: 16, 128>}, {pipeline_mode = #tpu.pipeline_mode<synchronous>, transform_indices = @transform_1, window_bounds = array<i64: 128, 128>}, {pipeline_mode = #tpu.pipeline_mode<synchronous>, transform_indices = @transform_2, window_bounds = array<i64: 8, 128>}, {transform_indices = @transform_3, window_bounds = array<i64: 16, 128>}]} {
    %c0 = arith.constant 0 : index
    %c0_0 = arith.constant 0 : index
    %0 = vector.load %arg1[%c0, %c0_0] : memref<16x128xf32, #tpu.memory_space<vmem>>, vector<16x128xf32>
    %c0_1 = arith.constant 0 : index
    %c0_2 = arith.constant 0 : index
    %1 = vector.load %arg3[%c0_1, %c0_2] : memref<8x128xf32, #tpu.memory_space<vmem>>, vector<8x128xf32>
    %2 = vector.extract_strided_slice %1 {offsets = [0, 0], sizes = [1, 128], strides = [1, 1]} : vector<8x128xf32> to vector<1x128xf32>
    %3 = vector.extract_strided_slice %1 {offsets = [1, 0], sizes = [1, 128], strides = [1, 1]} : vector<8x128xf32> to vector<1x128xf32>
    %4 = vector.extract_strided_slice %1 {offsets = [2, 0], sizes = [1, 128], strides = [1, 1]} : vector<8x128xf32> to vector<1x128xf32>
    %5 = vector.extract_strided_slice %1 {offsets = [3, 0], sizes = [1, 128], strides = [1, 1]} : vector<8x128xf32> to vector<1x128xf32>
    %6 = vector.extract_strided_slice %1 {offsets = [4, 0], sizes = [1, 128], strides = [1, 1]} : vector<8x128xf32> to vector<1x128xf32>
    %cst = arith.constant dense<0.000000e+00> : vector<16xf32>
    %7 = vector.multi_reduction <add>, %0, %cst [1] : vector<16x128xf32> to vector<16xf32>
    %8 = vector.shape_cast %7 : vector<16xf32> to vector<16x1xf32>
    %cst_3 = arith.constant 1.280000e+02 : f32
    %9 = vector.broadcast %cst_3 : f32 to vector<16x1xf32>
    %10 = arith.divf %8, %9 : vector<16x1xf32>
    %11 = vector.broadcast %10 : vector<16x1xf32> to vector<16x128xf32>
    %12 = arith.subf %0, %11 : vector<16x128xf32>
    %13 = arith.mulf %12, %12 : vector<16x128xf32>
    %cst_4 = arith.constant dense<0.000000e+00> : vector<16xf32>
    %14 = vector.multi_reduction <add>, %13, %cst_4 [1] : vector<16x128xf32> to vector<16xf32>
    %15 = vector.shape_cast %14 : vector<16xf32> to vector<16x1xf32>
    %cst_5 = arith.constant 1.280000e+02 : f32
    %16 = vector.broadcast %cst_5 : f32 to vector<16x1xf32>
    %17 = arith.divf %15, %16 : vector<16x1xf32>
    %cst_6 = arith.constant 9.99999974E-6 : f32
    %18 = vector.broadcast %cst_6 : f32 to vector<16x1xf32>
    %19 = arith.addf %17, %18 : vector<16x1xf32>
    %20 = math.rsqrt %19 : vector<16x1xf32>
    %21 = vector.broadcast %20 : vector<16x1xf32> to vector<16x128xf32>
    %22 = arith.mulf %12, %21 : vector<16x128xf32>
    %23 = vector.broadcast %3 : vector<1x128xf32> to vector<16x128xf32>
    %24 = arith.mulf %22, %23 : vector<16x128xf32>
    %25 = vector.broadcast %4 : vector<1x128xf32> to vector<16x128xf32>
    %26 = arith.addf %24, %25 : vector<16x128xf32>
    %c0_7 = arith.constant 0 : index
    %c0_8 = arith.constant 0 : index
    %27 = vector.load %arg2[%c0_7, %c0_8] : memref<128x128xf32, #tpu.memory_space<vmem>>, vector<128x128xf32>
    %cst_9 = arith.constant dense<0.000000e+00> : vector<16x128xf32>
    %28 = tpu.matmul %26, %27, %cst_9 {dimension_numbers = #tpu.dot_dimension_numbers<[1], [0], [0], [1], [0, 0, 1, 1], [], []>} : vector<16x128xf32>, vector<128x128xf32>, vector<16x128xf32> -> vector<16x128xf32>
    %29 = vector.broadcast %2 : vector<1x128xf32> to vector<16x128xf32>
    %30 = arith.addf %28, %29 : vector<16x128xf32>
    %31 = arith.addf %30, %26 : vector<16x128xf32>
    %cst_10 = arith.constant dense<0.000000e+00> : vector<16xf32>
    %32 = vector.multi_reduction <add>, %31, %cst_10 [1] : vector<16x128xf32> to vector<16xf32>
    %33 = vector.shape_cast %32 : vector<16xf32> to vector<16x1xf32>
    %cst_11 = arith.constant 1.280000e+02 : f32
    %34 = vector.broadcast %cst_11 : f32 to vector<16x1xf32>
    %35 = arith.divf %33, %34 : vector<16x1xf32>
    %36 = vector.broadcast %35 : vector<16x1xf32> to vector<16x128xf32>
    %37 = arith.subf %31, %36 : vector<16x128xf32>
    %38 = arith.mulf %37, %37 : vector<16x128xf32>
    %cst_12 = arith.constant dense<0.000000e+00> : vector<16xf32>
    %39 = vector.multi_reduction <add>, %38, %cst_12 [1] : vector<16x128xf32> to vector<16xf32>
    %40 = vector.shape_cast %39 : vector<16xf32> to vector<16x1xf32>
    %cst_13 = arith.constant 1.280000e+02 : f32
    %41 = vector.broadcast %cst_13 : f32 to vector<16x1xf32>
    %42 = arith.divf %40, %41 : vector<16x1xf32>
    %cst_14 = arith.constant 9.99999974E-6 : f32
    %43 = vector.broadcast %cst_14 : f32 to vector<16x1xf32>
    %44 = arith.addf %42, %43 : vector<16x1xf32>
    %45 = math.rsqrt %44 : vector<16x1xf32>
    %46 = vector.broadcast %45 : vector<16x1xf32> to vector<16x128xf32>
    %47 = arith.mulf %37, %46 : vector<16x128xf32>
    %48 = vector.broadcast %5 : vector<1x128xf32> to vector<16x128xf32>
    %49 = arith.mulf %47, %48 : vector<16x128xf32>
    %50 = vector.broadcast %6 : vector<1x128xf32> to vector<16x128xf32>
    %51 = arith.addf %49, %50 : vector<16x128xf32>
    %c0_15 = arith.constant 0 : index
    %c0_16 = arith.constant 0 : index
    %52 = vector.load %arg4[%c0_15, %c0_16] : memref<16x128xf32, #tpu.memory_space<vmem>>, vector<16x128xf32>
    tpu.vector_store %arg4[%c0_15, %c0_16], %51 {strides = array<i32>} : memref<16x128xf32, #tpu.memory_space<vmem>>, vector<16x128xf32>,
    return
  }
  func.func @transform_0(%arg0: i32) -> (i32, i32) {
    %c0_i32 = arith.constant 0 : i32
    %c0_i32_0 = arith.constant 0 : i32
    return %arg0, %c0_i32 : i32, i32
  }
  func.func @transform_1(%arg0: i32) -> (i32, i32) {
    %c0_i32 = arith.constant 0 : i32
    %c0_i32_0 = arith.constant 0 : i32
    %c0_i32_1 = arith.constant 0 : i32
    return %c0_i32, %c0_i32_0 : i32, i32
  }
  func.func @transform_2(%arg0: i32) -> (i32, i32) {
    %c0_i32 = arith.constant 0 : i32
    %c0_i32_0 = arith.constant 0 : i32
    %c0_i32_1 = arith.constant 0 : i32
    return %c0_i32, %c0_i32_0 : i32, i32
  }
  func.func @transform_3(%arg0: i32) -> (i32, i32) {
    %c0_i32 = arith.constant 0 : i32
    %c0_i32_0 = arith.constant 0 : i32
    return %arg0, %c0_i32 : i32, i32
  }
}

</mosaic_0001>

<bundles_post_ra>
// kernel: tpu_custom_call.1
= control target key start
LH: loop header
LB: loop body
LE: loop exit
PB: predicated region body
PF: predicated region fallthrough
CT: control target
= control target key end

     0   :  { %8 = vsyncpa [#allocation3], 0  ;;  %s436_s0 = inlined_call_operand.hbm [shape: f32[16,128], index: 0, kind: input, shape index: {}]   ;;  %s437_s1 = inlined_call_operand.hbm [shape: f32[128,128], index: 1, kind: input, shape index: {}]   ;;  %s438_s2 = inlined_call_operand.hbm [shape: f32[8,128], index: 2, kind: input, shape index: {}]   ;;  %s439_s3 = inlined_call_operand.hbm [shape: f32[16,128], index: 3, kind: output, shape index: {}]  }
   0x1   :  { %9 = vsyncpa [#allocation6], 0 }
   0x2   :  { %10 = vsyncpa [#allocation4], 0  ;;  %s28_s14 = sshll.u32 %s437_s1, 4  ;;  %s361_s15 = smov [#allocation5]   ;;  %s29_s14 = int_to_ptr.hbm [resolvable:$true] %s28_s14 }
   0x3   :  { %s30_s16 = sshll.u32 %s361_s15, 4  ;;  %s15_s19 = sshll.u32 %s436_s0, 4  ;;  %s31_s16 = int_to_ptr.vmem [resolvable:$true] %s30_s16  ;;  %s16_s19 = int_to_ptr.hbm [resolvable:$true] %s15_s19 }
   0x4   :  { %s362_s20 = smov 128   ;;  %s363_s21 = smov 8  }
   0x5   :  { %36 = dma.hbm_to_vmem [thread:$0]  %s29_s14, 2048, %s31_s16, [#allocation6], %s362_s20, %s362_s20, %s363_s21  }
   0x6   :  { %s364_s22 = smov [#allocation2]   ;;  %s42_s1 = sshll.u32 %s438_s2, 4  ;;  %s43_s1 = int_to_ptr.hbm [resolvable:$true] %s42_s1 }
   0x7   :  { %s17_s23 = sshll.u32 %s364_s22, 4  ;;  %s365_s0 = smov [#allocation7]   ;;  %s18_s23 = int_to_ptr.vmem [resolvable:$true] %s17_s23 }
   0x8   :  { %23 = dma.hbm_to_vmem [thread:$0]  %s16_s19, 256, %s18_s23, [#allocation3], %s362_s20, %s362_s20, %s363_s21  }
   0x9   :  { %s44_s26 = sshll.u32 %s365_s0, 4  ;;  %s45_s26 = int_to_ptr.vmem [resolvable:$true] %s44_s26 }
   0xa   :  { %47 = dma.hbm_to_vmem [thread:$0]  %s43_s1, 128, %s45_s26, [#allocation6]  }
   0xb   :  { %355 = dma.done.wait [#allocation3], 256  }
   0xc   :  { %356 = vsyncadd [#allocation3], 4294967040 }
   0xd   :  { %357 = dma.done.wait [#allocation6], 2176  }
   0xe   :  { %358 = vsyncadd [#allocation6], 4294965120  ;;  %v60_v0 = vld [vmem:[#allocation2] sm:$0xff]  ;;  %v61_v1 = vld [vmem:[#allocation2 + $0x8] sm:$0xff]  ;;  %v366_v2 = vmov 128.0   ;;  %s367_s2 = smov [#allocation8]  }
   0xf   :  { %63 = vadd.xlane.f32.xlu0 %v60_v0  ;;  %249 = vrcp.f32 %v366_v2  ;;  %v131_v5 = vld [vmem:[#allocation5 + $0x78] sm:$0xff]  ;;  %v130_v6 = vld [vmem:[#allocation5 + $0x70] sm:$0xff]  ;;  %v129_v19 = vld [vmem:[#allocation5 + $0x68] sm:$0xff]  ;;  %s210_s27 = sshll.u32 %s367_s2, 4  ;;  %s212_s30 = sshll.u32 %s439_s3, 4  ;;  %s211_s27 = int_to_ptr.vmem [resolvable:$true] %s210_s27  ;;  %s213_s30 = int_to_ptr.hbm [resolvable:$true] %s212_s30 }
  0x10   :  { %133 = vmatpush.msra.mxu0 %v131_v5  ;;  %226 = vmatpush.msra.mxu1 %v131_v5  ;;  %v128_v20 = vld [vmem:[#allocation5 + $0x60] sm:$0xff]  ;;  %v127_v21 = vld [vmem:[#allocation5 + $0x58] sm:$0xff]  ;;  %v126_v22 = vld [vmem:[#allocation5 + $0x50] sm:$0xff] }
  0x11   :  { %v125_v23 = vld [vmem:[#allocation5 + $0x48] sm:$0xff]  ;;  %v124_v24 = vld [vmem:[#allocation5 + $0x40] sm:$0xff]  ;;  %v123_v25 = vld [vmem:[#allocation5 + $0x38] sm:$0xff] }
  0x12   :  { %134 = vmatpush.msra.mxu0 %v130_v6  ;;  %227 = vmatpush.msra.mxu1 %v130_v6  ;;  %v122_v26 = vld [vmem:[#allocation5 + $0x30] sm:$0xff]  ;;  %v121_v27 = vld [vmem:[#allocation5 + $0x28] sm:$0xff]  ;;  %v120_v28 = vld [vmem:[#allocation5 + $0x20] sm:$0xff] }
  0x13   :  { %v119_v29 = vld [vmem:[#allocation5 + $0x18] sm:$0xff]  ;;  %v118_v30 = vld [vmem:[#allocation5 + $0x10] sm:$0xff]  ;;  %v117_v31 = vld [vmem:[#allocation5 + $0x8] sm:$0xff] }
  0x14   :  { %135 = vmatpush.msra.mxu0 %v129_v19  ;;  %228 = vmatpush.msra.mxu1 %v129_v19  ;;  %v116_v32 = vld [vmem:[#allocation5] sm:$0xff] }
  0x15   :  { %v250_v3 = vpop.eup %249  ;;  %v417_v44 = vld [vmem:[#allocation7] sm:$0xff] }
  0x16   :  { %v68_v4 = vmul.f32 128.0, %v250_v3  ;;  %vm72_vm0 = vweird.f32 %v250_v3  ;;  %136 = vmatpush.msra.mxu0 %v128_v20  ;;  %229 = vmatpush.msra.mxu1 %v128_v20  ;;  %v110_v48 = vperm.slane %v417_v44, 1  ;;  %v113_v52 = vperm.slane %v417_v44, 2 }
  0x17   :  { %65 = vadd.xlane.f32.xlu0 %v61_v1  ;;  %v132_v62 = vperm.slane %v417_v44, 0 }
  0x18   :  { %v69_v7 = vsub.f32 1.0, %v68_v4  ;;  %137 = vmatpush.msra.mxu0 %v127_v21  ;;  %230 = vmatpush.msra.mxu1 %v127_v21 }
  0x1a   :  { %v70_v8 = vmul.f32 %v250_v3, %v69_v7  ;;  %138 = vmatpush.msra.mxu0 %v126_v22  ;;  %231 = vmatpush.msra.mxu1 %v126_v22 }
  0x1c   :  { %v71_v9 = vadd.f32 %v250_v3, %v70_v8  ;;  %139 = vmatpush.msra.mxu0 %v125_v23  ;;  %232 = vmatpush.msra.mxu1 %v125_v23 }
  0x1e   :  { %v403_v10 = vsel %vm72_vm0, %v250_v3, %v71_v9  ;;  %140 = vmatpush.msra.mxu0 %v124_v24  ;;  %233 = vmatpush.msra.mxu1 %v124_v24 }
  0x20   :  { %141 = vmatpush.msra.mxu0 %v123_v25  ;;  %234 = vmatpush.msra.mxu1 %v123_v25 }
  0x22   :  { %142 = vmatpush.msra.mxu0 %v122_v26  ;;  %235 = vmatpush.msra.mxu1 %v122_v26 }
  0x24   :  { %143 = vmatpush.msra.mxu0 %v121_v27  ;;  %236 = vmatpush.msra.mxu1 %v121_v27 }
  0x26   :  { %144 = vmatpush.msra.mxu0 %v120_v28  ;;  %237 = vmatpush.msra.mxu1 %v120_v28  ;;  %v198_v28 = vperm.slane %v417_v44, 3 }
  0x28   :  { %145 = vmatpush.msra.mxu0 %v119_v29  ;;  %238 = vmatpush.msra.mxu1 %v119_v29 }
  0x2a   :  { %146 = vmatpush.msra.mxu0 %v118_v30  ;;  %239 = vmatpush.msra.mxu1 %v118_v30 }
  0x2c   :  { %147 = vmatpush.msra.mxu0 %v117_v31  ;;  %240 = vmatpush.msra.mxu1 %v117_v31 }
  0x2e   :  { %148 = vmatpush.msra.mxu0 %v116_v32  ;;  %241 = vmatpush.msra.mxu1 %v116_v32 }
  0x82   :  { %v64_v11 = vpop.xlane.xlu0 %63 }
  0x83   :  { %v74_v12 = vmul.f32 %v403_v10, %v64_v11 }
  0x85   :  { %v406_v13 = vsub.f32 %v60_v0, %v74_v12 }
  0x87   :  { %v78_v14 = vmul.f32 %v406_v13, %v406_v13 }
  0x89   :  { %80 = vadd.xlane.f32.xlu1 %v78_v14 }
  0x8a   :  { %v66_v15 = vpop.xlane.xlu0 %65 }
  0x8b   :  { %v75_v16 = vmul.f32 %v403_v10, %v66_v15 }
  0x8d   :  { %v411_v17 = vsub.f32 %v61_v1, %v75_v16 }
  0x8f   :  { %v79_v18 = vmul.f32 %v411_v17, %v411_v17 }
  0x91   :  { %82 = vadd.xlane.f32.xlu1 %v79_v18 }
  0xfc   :  { %v81_v33 = vpop.xlane.xlu1 %80 }
  0xfd   :  { %v84_v34 = vmul.f32 %v81_v33, %v403_v10 }
  0xff   :  { %v86_v35 = vadd.f32 1e-05, %v84_v34 }
 0x101   :  { %251 = vrsqrt.f32 %v86_v35  ;;  %vm94_vm2 = vweird.f32 %v86_v35 }
 0x104   :  { %v83_v36 = vpop.xlane.xlu1 %82 }
 0x105   :  { %v85_v37 = vmul.f32 %v83_v36, %v403_v10 }
 0x107   :  { %v252_v38 = vpop.eup %251  ;;  %v87_v39 = vadd.f32 1e-05, %v85_v37 }
 0x108   :  { %v89_v40 = vmul.f32 %v252_v38, %v86_v35  ;;  %vm95_vm1 = vweird.f32 %v252_v38 }
 0x109   :  { %253 = vrsqrt.f32 %v87_v39  ;;  %vm96_vm3 = vmor %vm94_vm2, %vm95_vm1  ;;  %vm104_vm5 = vweird.f32 %v87_v39 }
 0x10a   :  { %v90_v41 = vmul.f32 %v252_v38, %v89_v40 }
 0x10c   :  { %v91_v42 = vmul.f32 0.5, %v90_v41 }
 0x10e   :  { %v92_v43 = vsub.f32 1.5, %v91_v42 }
 0x10f   :  { %v254_v45 = vpop.eup %253 }
 0x110   :  { %v93_v46 = vmul.f32 %v252_v38, %v92_v43  ;;  %v99_v47 = vmul.f32 %v254_v45, %v87_v39  ;;  %vm105_vm4 = vweird.f32 %v254_v45 }
 0x111   :  { %vm106_vm6 = vmor %vm104_vm5, %vm105_vm4 }
 0x112   :  { %v100_v49 = vmul.f32 %v254_v45, %v99_v47  ;;  %v97_v50 = vsel %vm96_vm3, %v252_v38, %v93_v46 }
 0x113   :  { %v108_v51 = vmul.f32 %v97_v50, %v406_v13 }
 0x114   :  { %v101_v53 = vmul.f32 0.5, %v100_v49 }
 0x115   :  { %v111_v54 = vmul.f32 %v110_v48, %v108_v51 }
 0x116   :  { %v102_v55 = vsub.f32 1.5, %v101_v53 }
 0x117   :  { %v114_v56 = vadd.f32 %v113_v52, %v111_v54 }
 0x118   :  { %v103_v57 = vmul.f32 %v254_v45, %v102_v55 }
 0x119   :  { %149 = vmatmul.f32.vlgmr.msra.gmra.mxu0 %v114_v56 }
 0x11a   :  { %v107_v58 = vsel %vm106_vm6, %v254_v45, %v103_v57 }
 0x11b   :  { %v109_v59 = vmul.f32 %v107_v58, %v411_v17 }
 0x11d   :  { %v112_v60 = vmul.f32 %v110_v48, %v109_v59 }
 0x11f   :  { %v115_v61 = vadd.f32 %v113_v52, %v112_v60 }
 0x121   :  { %152 = vmatmul.f32.vlgmr.msra.gmra.mxu1 %v115_v61 }
 0x196   :  { %v150_v63 = vpop.f32.mrf.mxu0 }
 0x197   :  { %v151_v0 = vadd.f32 %v150_v63, %v132_v62 }
 0x199   :  { %v156_v1 = vadd.f32 %v151_v0, %v114_v56 }
 0x19b   :  { %158 = vadd.xlane.f32.xlu2 %v156_v1 }
 0x19e   :  { %v153_v2 = vpop.f32.mrf.mxu1 }
 0x19f   :  { %v154_v3 = vadd.f32 %v153_v2, %v132_v62 }
 0x1a1   :  { %v157_v4 = vadd.f32 %v154_v3, %v115_v61 }
 0x1a3   :  { %160 = vadd.xlane.f32.xlu2 %v157_v4 }
 0x20e   :  { %v159_v5 = vpop.xlane.xlu2 %158 }
 0x20f   :  { %v162_v6 = vmul.f32 %v159_v5, %v403_v10 }
 0x211   :  { %v164_v7 = vsub.f32 %v156_v1, %v162_v6 }
 0x213   :  { %v166_v8 = vmul.f32 %v164_v7, %v164_v7 }
 0x215   :  { %168 = vadd.xlane.f32.xlu0 %v166_v8 }
 0x216   :  { %v161_v9 = vpop.xlane.xlu2 %160 }
 0x217   :  { %v163_v11 = vmul.f32 %v161_v9, %v403_v10 }
 0x219   :  { %v165_v12 = vsub.f32 %v157_v4, %v163_v11 }
 0x21b   :  { %v167_v13 = vmul.f32 %v165_v12, %v165_v12 }
 0x21d   :  { %170 = vadd.xlane.f32.xlu1 %v167_v13 }
 0x288   :  { %v169_v14 = vpop.xlane.xlu0 %168 }
 0x289   :  { %v172_v15 = vmul.f32 %v169_v14, %v403_v10 }
 0x28b   :  { %v174_v16 = vadd.f32 1e-05, %v172_v15 }
 0x28d   :  { %255 = vrsqrt.f32 %v174_v16  ;;  %vm182_vm8 = vweird.f32 %v174_v16 }
 0x290   :  { %v171_v17 = vpop.xlane.xlu1 %170 }
 0x291   :  { %v173_v18 = vmul.f32 %v171_v17, %v403_v10  ;;  %v201_v10 = vperm.slane %v417_v44, 4 }
 0x293   :  { %v256_v19 = vpop.eup %255  ;;  %v175_v20 = vadd.f32 1e-05, %v173_v18 }
 0x294   :  { %v177_v21 = vmul.f32 %v256_v19, %v174_v16  ;;  %vm183_vm7 = vweird.f32 %v256_v19 }
 0x295   :  { %257 = vrsqrt.f32 %v175_v20  ;;  %vm184_vm9 = vmor %vm182_vm8, %vm183_vm7  ;;  %vm192_vm11 = vweird.f32 %v175_v20 }
 0x296   :  { %v178_v22 = vmul.f32 %v256_v19, %v177_v21 }
 0x298   :  { %v179_v23 = vmul.f32 0.5, %v178_v22 }
 0x29a   :  { %v180_v24 = vsub.f32 1.5, %v179_v23 }
 0x29b   :  { %v258_v25 = vpop.eup %257 }
 0x29c   :  { %v181_v26 = vmul.f32 %v256_v19, %v180_v24  ;;  %v187_v27 = vmul.f32 %v258_v25, %v175_v20  ;;  %vm193_vm10 = vweird.f32 %v258_v25 }
 0x29d   :  { %vm194_vm12 = vmor %vm192_vm11, %vm193_vm10 }
 0x29e   :  { %v185_v29 = vsel %vm184_vm9, %v256_v19, %v181_v26  ;;  %v188_v30 = vmul.f32 %v258_v25, %v187_v27 }
 0x29f   :  { %v196_v31 = vmul.f32 %v185_v29, %v164_v7 }
 0x2a0   :  { %v189_v32 = vmul.f32 0.5, %v188_v30 }
 0x2a1   :  { %v199_v33 = vmul.f32 %v198_v28, %v196_v31 }
 0x2a2   :  { %v190_v34 = vsub.f32 1.5, %v189_v32 }
 0x2a3   :  { %v202_v35 = vadd.f32 %v201_v10, %v199_v33 }
 0x2a4   :  { %v191_v36 = vmul.f32 %v258_v25, %v190_v34 }
 0x2a5   :  { %204 = vst [vmem:[#allocation8] sm:$0xff] %v202_v35 }
 0x2a6   :  { %v195_v37 = vsel %vm194_vm12, %v258_v25, %v191_v36 }
 0x2a7   :  { %v197_v38 = vmul.f32 %v195_v37, %v165_v12 }
 0x2a9   :  { %v200_v39 = vmul.f32 %v198_v28, %v197_v38 }
 0x2ab   :  { %v203_v40 = vadd.f32 %v201_v10, %v200_v39 }
 0x2ad   :  { %205 = vst [vmem:[#allocation8 + $0x8] sm:$0xff] %v203_v40 }
 0x2ae   :  { %218 = dma.vmem_to_hbm [thread:$0]  %s211_s27, 256, %s213_s30, [#allocation4], %s362_s20, %s362_s20, %s363_s21  }
 0x2af   :  { %359 = dma.done.wait [#allocation4], 256  }
 0x2b0   :  { %360 = vsyncadd [#allocation4], 4294967040 }
 0x2b1   :  { %223 = vsyncpa [#allocation3], 1 }
 0x2b2   :  { %224 = vsyncpa [#allocation6], 1 }
 0x2b3   :  { %225 = vsyncpa [#allocation4], 1 }

// kernel: tpu_custom_call.1
= control target key start
LH: loop header
LB: loop body
LE: loop exit
PB: predicated region body
PF: predicated region fallthrough
CT: control target
= control target key end

     0   :  { %8 = vsyncpa [#allocation3], 0  ;;  %s436_s0 = inlined_call_operand.hbm [shape: f32[16,128], index: 0, kind: input, shape index: {}]   ;;  %s437_s1 = inlined_call_operand.hbm [shape: f32[128,128], index: 1, kind: input, shape index: {}]   ;;  %s438_s2 = inlined_call_operand.hbm [shape: f32[8,128], index: 2, kind: input, shape index: {}]   ;;  %s439_s3 = inlined_call_operand.hbm [shape: f32[16,128], index: 3, kind: output, shape index: {}]  }
   0x1   :  { %9 = vsyncpa [#allocation6], 0 }
   0x2   :  { %10 = vsyncpa [#allocation4], 0  ;;  %s28_s14 = sshll.u32 %s437_s1, 4  ;;  %s361_s15 = smov [#allocation5]   ;;  %s29_s14 = int_to_ptr.hbm [resolvable:$true] %s28_s14 }
   0x3   :  { %s30_s16 = sshll.u32 %s361_s15, 4  ;;  %s15_s19 = sshll.u32 %s436_s0, 4  ;;  %s31_s16 = int_to_ptr.vmem [resolvable:$true] %s30_s16  ;;  %s16_s19 = int_to_ptr.hbm [resolvable:$true] %s15_s19 }
   0x4   :  { %s362_s20 = smov 128   ;;  %s363_s21 = smov 8  }
   0x5   :  { %36 = dma.hbm_to_vmem [thread:$0]  %s29_s14, 2048, %s31_s16, [#allocation6], %s362_s20, %s362_s20, %s363_s21  }
   0x6   :  { %s364_s22 = smov [#allocation2]   ;;  %s42_s1 = sshll.u32 %s438_s2, 4  ;;  %s43_s1 = int_to_ptr.hbm [resolvable:$true] %s42_s1 }
   0x7   :  { %s17_s23 = sshll.u32 %s364_s22, 4  ;;  %s365_s0 = smov [#allocation7]   ;;  %s18_s23 = int_to_ptr.vmem [resolvable:$true] %s17_s23 }
   0x8   :  { %23 = dma.hbm_to_vmem [thread:$0]  %s16_s19, 256, %s18_s23, [#allocation3], %s362_s20, %s362_s20, %s363_s21  }
   0x9   :  { %s44_s26 = sshll.u32 %s365_s0, 4  ;;  %s45_s26 = int_to_ptr.vmem [resolvable:$true] %s44_s26 }
   0xa   :  { %47 = dma.hbm_to_vmem [thread:$0]  %s43_s1, 128, %s45_s26, [#allocation6]  }
   0xb   :  { %355 = dma.done.wait [#allocation3], 256  }
   0xc   :  { %356 = vsyncadd [#allocation3], 4294967040 }
   0xd   :  { %357 = dma.done.wait [#allocation6], 2176  }
   0xe   :  { %358 = vsyncadd [#allocation6], 4294965120  ;;  %v60_v0 = vld [vmem:[#allocation2] sm:$0xff]  ;;  %v61_v1 = vld [vmem:[#allocation2 + $0x8] sm:$0xff]  ;;  %v366_v2 = vmov 128.0   ;;  %s367_s2 = smov [#allocation8]  }
   0xf   :  { %63 = vadd.xlane.f32.xlu0 %v60_v0  ;;  %249 = vrcp.f32 %v366_v2  ;;  %v131_v5 = vld [vmem:[#allocation5 + $0x78] sm:$0xff]  ;;  %v130_v6 = vld [vmem:[#allocation5 + $0x70] sm:$0xff]  ;;  %v129_v19 = vld [vmem:[#allocation5 + $0x68] sm:$0xff]  ;;  %s210_s27 = sshll.u32 %s367_s2, 4  ;;  %s212_s30 = sshll.u32 %s439_s3, 4  ;;  %s211_s27 = int_to_ptr.vmem [resolvable:$true] %s210_s27  ;;  %s213_s30 = int_to_ptr.hbm [resolvable:$true] %s212_s30 }
  0x10   :  { %133 = vmatpush.msra.mxu0 %v131_v5  ;;  %226 = vmatpush.msra.mxu1 %v131_v5  ;;  %v128_v20 = vld [vmem:[#allocation5 + $0x60] sm:$0xff]  ;;  %v127_v21 = vld [vmem:[#allocation5 + $0x58] sm:$0xff]  ;;  %v126_v22 = vld [vmem:[#allocation5 + $0x50] sm:$0xff] }
  0x11   :  { %v125_v23 = vld [vmem:[#allocation5 + $0x48] sm:$0xff]  ;;  %v124_v24 = vld [vmem:[#allocation5 + $0x40] sm:$0xff]  ;;  %v123_v25 = vld [vmem:[#allocation5 + $0x38] sm:$0xff] }
  0x12   :  { %134 = vmatpush.msra.mxu0 %v130_v6  ;;  %227 = vmatpush.msra.mxu1 %v130_v6  ;;  %v122_v26 = vld [vmem:[#allocation5 + $0x30] sm:$0xff]  ;;  %v121_v27 = vld [vmem:[#allocation5 + $0x28] sm:$0xff]  ;;  %v120_v28 = vld [vmem:[#allocation5 + $0x20] sm:$0xff] }
  0x13   :  { %v119_v29 = vld [vmem:[#allocation5 + $0x18] sm:$0xff]  ;;  %v118_v30 = vld [vmem:[#allocation5 + $0x10] sm:$0xff]  ;;  %v117_v31 = vld [vmem:[#allocation5 + $0x8] sm:$0xff] }
  0x14   :  { %135 = vmatpush.msra.mxu0 %v129_v19  ;;  %228 = vmatpush.msra.mxu1 %v129_v19  ;;  %v116_v32 = vld [vmem:[#allocation5] sm:$0xff] }
  0x15   :  { %v250_v3 = vpop.eup %249  ;;  %v417_v44 = vld [vmem:[#allocation7] sm:$0xff] }
  0x16   :  { %v68_v4 = vmul.f32 128.0, %v250_v3  ;;  %vm72_vm0 = vweird.f32 %v250_v3  ;;  %136 = vmatpush.msra.mxu0 %v128_v20  ;;  %229 = vmatpush.msra.mxu1 %v128_v20  ;;  %v110_v48 = vperm.slane %v417_v44, 1  ;;  %v113_v52 = vperm.slane %v417_v44, 2 }
  0x17   :  { %65 = vadd.xlane.f32.xlu0 %v61_v1  ;;  %v132_v62 = vperm.slane %v417_v44, 0 }
  0x18   :  { %v69_v7 = vsub.f32 1.0, %v68_v4  ;;  %137 = vmatpush.msra.mxu0 %v127_v21  ;;  %230 = vmatpush.msra.mxu1 %v127_v21 }
  0x1a   :  { %v70_v8 = vmul.f32 %v250_v3, %v69_v7  ;;  %138 = vmatpush.msra.mxu0 %v126_v22  ;;  %231 = vmatpush.msra.mxu1 %v126_v22 }
  0x1c   :  { %v71_v9 = vadd.f32 %v250_v3, %v70_v8  ;;  %139 = vmatpush.msra.mxu0 %v125_v23  ;;  %232 = vmatpush.msra.mxu1 %v125_v23 }
  0x1e   :  { %v403_v10 = vsel %vm72_vm0, %v250_v3, %v71_v9  ;;  %140 = vmatpush.msra.mxu0 %v124_v24  ;;  %233 = vmatpush.msra.mxu1 %v124_v24 }
  0x20   :  { %141 = vmatpush.msra.mxu0 %v123_v25  ;;  %234 = vmatpush.msra.mxu1 %v123_v25 }
  0x22   :  { %142 = vmatpush.msra.mxu0 %v122_v26  ;;  %235 = vmatpush.msra.mxu1 %v122_v26 }
  0x24   :  { %143 = vmatpush.msra.mxu0 %v121_v27  ;;  %236 = vmatpush.msra.mxu1 %v121_v27 }
  0x26   :  { %144 = vmatpush.msra.mxu0 %v120_v28  ;;  %237 = vmatpush.msra.mxu1 %v120_v28  ;;  %v198_v28 = vperm.slane %v417_v44, 3 }
  0x28   :  { %145 = vmatpush.msra.mxu0 %v119_v29  ;;  %238 = vmatpush.msra.mxu1 %v119_v29 }
  0x2a   :  { %146 = vmatpush.msra.mxu0 %v118_v30  ;;  %239 = vmatpush.msra.mxu1 %v118_v30 }
  0x2c   :  { %147 = vmatpush.msra.mxu0 %v117_v31  ;;  %240 = vmatpush.msra.mxu1 %v117_v31 }
  0x2e   :  { %148 = vmatpush.msra.mxu0 %v116_v32  ;;  %241 = vmatpush.msra.mxu1 %v116_v32 }
  0x82   :  { %v64_v11 = vpop.xlane.xlu0 %63 }
  0x83   :  { %v74_v12 = vmul.f32 %v403_v10, %v64_v11 }
  0x85   :  { %v406_v13 = vsub.f32 %v60_v0, %v74_v12 }
  0x87   :  { %v78_v14 = vmul.f32 %v406_v13, %v406_v13 }
  0x89   :  { %80 = vadd.xlane.f32.xlu1 %v78_v14 }
  0x8a   :  { %v66_v15 = vpop.xlane.xlu0 %65 }
  0x8b   :  { %v75_v16 = vmul.f32 %v403_v10, %v66_v15 }
  0x8d   :  { %v411_v17 = vsub.f32 %v61_v1, %v75_v16 }
  0x8f   :  { %v79_v18 = vmul.f32 %v411_v17, %v411_v17 }
  0x91   :  { %82 = vadd.xlane.f32.xlu1 %v79_v18 }
  0xfc   :  { %v81_v33 = vpop.xlane.xlu1 %80 }
  0xfd   :  { %v84_v34 = vmul.f32 %v81_v33, %v403_v10 }
  0xff   :  { %v86_v35 = vadd.f32 1e-05, %v84_v34 }
 0x101   :  { %251 = vrsqrt.f32 %v86_v35  ;;  %vm94_vm2 = vweird.f32 %v86_v35 }
 0x104   :  { %v83_v36 = vpop.xlane.xlu1 %82 }
 0x105   :  { %v85_v37 = vmul.f32 %v83_v36, %v403_v10 }
 0x107   :  { %v252_v38 = vpop.eup %251  ;;  %v87_v39 = vadd.f32 1e-05, %v85_v37 }
 0x108   :  { %v89_v40 = vmul.f32 %v252_v38, %v86_v35  ;;  %vm95_vm1 = vweird.f32 %v252_v38 }
 0x109   :  { %253 = vrsqrt.f32 %v87_v39  ;;  %vm96_vm3 = vmor %vm94_vm2, %vm95_vm1  ;;  %vm104_vm5 = vweird.f32 %v87_v39 }
 0x10a   :  { %v90_v41 = vmul.f32 %v252_v38, %v89_v40 }
 0x10c   :  { %v91_v42 = vmul.f32 0.5, %v90_v41 }
 0x10e   :  { %v92_v43 = vsub.f32 1.5, %v91_v42 }
 0x10f   :  { %v254_v45 = vpop.eup %253 }
 0x110   :  { %v93_v46 = vmul.f32 %v252_v38, %v92_v43  ;;  %v99_v47 = vmul.f32 %v254_v45, %v87_v39  ;;  %vm105_vm4 = vweird.f32 %v254_v45 }
 0x111   :  { %vm106_vm6 = vmor %vm104_vm5, %vm105_vm4 }
 0x112   :  { %v100_v49 = vmul.f32 %v254_v45, %v99_v47  ;;  %v97_v50 = vsel %vm96_vm3, %v252_v38, %v93_v46 }
 0x113   :  { %v108_v51 = vmul.f32 %v97_v50, %v406_v13 }
 0x114   :  { %v101_v53 = vmul.f32 0.5, %v100_v49 }
 0x115   :  { %v111_v54 = vmul.f32 %v110_v48, %v108_v51 }
 0x116   :  { %v102_v55 = vsub.f32 1.5, %v101_v53 }
 0x117   :  { %v114_v56 = vadd.f32 %v113_v52, %v111_v54 }
 0x118   :  { %v103_v57 = vmul.f32 %v254_v45, %v102_v55 }
 0x119   :  { %149 = vmatmul.f32.vlgmr.msra.gmra.mxu0 %v114_v56 }
 0x11a   :  { %v107_v58 = vsel %vm106_vm6, %v254_v45, %v103_v57 }
 0x11b   :  { %v109_v59 = vmul.f32 %v107_v58, %v411_v17 }
 0x11d   :  { %v112_v60 = vmul.f32 %v110_v48, %v109_v59 }
 0x11f   :  { %v115_v61 = vadd.f32 %v113_v52, %v112_v60 }
 0x121   :  { %152 = vmatmul.f32.vlgmr.msra.gmra.mxu1 %v115_v61 }
 0x196   :  { %v150_v63 = vpop.f32.mrf.mxu0 }
 0x197   :  { %v151_v0 = vadd.f32 %v150_v63, %v132_v62 }
 0x199   :  { %v156_v1 = vadd.f32 %v151_v0, %v114_v56 }
 0x19b   :  { %158 = vadd.xlane.f32.xlu2 %v156_v1 }
 0x19e   :  { %v153_v2 = vpop.f32.mrf.mxu1 }
 0x19f   :  { %v154_v3 = vadd.f32 %v153_v2, %v132_v62 }
 0x1a1   :  { %v157_v4 = vadd.f32 %v154_v3, %v115_v61 }
 0x1a3   :  { %160 = vadd.xlane.f32.xlu2 %v157_v4 }
 0x20e   :  { %v159_v5 = vpop.xlane.xlu2 %158 }
 0x20f   :  { %v162_v6 = vmul.f32 %v159_v5, %v403_v10 }
 0x211   :  { %v164_v7 = vsub.f32 %v156_v1, %v162_v6 }
 0x213   :  { %v166_v8 = vmul.f32 %v164_v7, %v164_v7 }
 0x215   :  { %168 = vadd.xlane.f32.xlu0 %v166_v8 }
 0x216   :  { %v161_v9 = vpop.xlane.xlu2 %160 }
 0x217   :  { %v163_v11 = vmul.f32 %v161_v9, %v403_v10 }
 0x219   :  { %v165_v12 = vsub.f32 %v157_v4, %v163_v11 }
 0x21b   :  { %v167_v13 = vmul.f32 %v165_v12, %v165_v12 }
 0x21d   :  { %170 = vadd.xlane.f32.xlu1 %v167_v13 }
 0x288   :  { %v169_v14 = vpop.xlane.xlu0 %168 }
 0x289   :  { %v172_v15 = vmul.f32 %v169_v14, %v403_v10 }
 0x28b   :  { %v174_v16 = vadd.f32 1e-05, %v172_v15 }
 0x28d   :  { %255 = vrsqrt.f32 %v174_v16  ;;  %vm182_vm8 = vweird.f32 %v174_v16 }
 0x290   :  { %v171_v17 = vpop.xlane.xlu1 %170 }
 0x291   :  { %v173_v18 = vmul.f32 %v171_v17, %v403_v10  ;;  %v201_v10 = vperm.slane %v417_v44, 4 }
 0x293   :  { %v256_v19 = vpop.eup %255  ;;  %v175_v20 = vadd.f32 1e-05, %v173_v18 }
 0x294   :  { %v177_v21 = vmul.f32 %v256_v19, %v174_v16  ;;  %vm183_vm7 = vweird.f32 %v256_v19 }
 0x295   :  { %257 = vrsqrt.f32 %v175_v20  ;;  %vm184_vm9 = vmor %vm182_vm8, %vm183_vm7  ;;  %vm192_vm11 = vweird.f32 %v175_v20 }
 0x296   :  { %v178_v22 = vmul.f32 %v256_v19, %v177_v21 }
 0x298   :  { %v179_v23 = vmul.f32 0.5, %v178_v22 }
 0x29a   :  { %v180_v24 = vsub.f32 1.5, %v179_v23 }
 0x29b   :  { %v258_v25 = vpop.eup %257 }
 0x29c   :  { %v181_v26 = vmul.f32 %v256_v19, %v180_v24  ;;  %v187_v27 = vmul.f32 %v258_v25, %v175_v20  ;;  %vm193_vm10 = vweird.f32 %v258_v25 }
 0x29d   :  { %vm194_vm12 = vmor %vm192_vm11, %vm193_vm10 }
 0x29e   :  { %v185_v29 = vsel %vm184_vm9, %v256_v19, %v181_v26  ;;  %v188_v30 = vmul.f32 %v258_v25, %v187_v27 }
 0x29f   :  { %v196_v31 = vmul.f32 %v185_v29, %v164_v7 }
 0x2a0   :  { %v189_v32 = vmul.f32 0.5, %v188_v30 }
 0x2a1   :  { %v199_v33 = vmul.f32 %v198_v28, %v196_v31 }
 0x2a2   :  { %v190_v34 = vsub.f32 1.5, %v189_v32 }
 0x2a3   :  { %v202_v35 = vadd.f32 %v201_v10, %v199_v33 }
 0x2a4   :  { %v191_v36 = vmul.f32 %v258_v25, %v190_v34 }
 0x2a5   :  { %204 = vst [vmem:[#allocation8] sm:$0xff] %v202_v35 }
 0x2a6   :  { %v195_v37 = vsel %vm194_vm12, %v258_v25, %v191_v36 }
 0x2a7   :  { %v197_v38 = vmul.f32 %v195_v37, %v165_v12 }
 0x2a9   :  { %v200_v39 = vmul.f32 %v198_v28, %v197_v38 }
 0x2ab   :  { %v203_v40 = vadd.f32 %v201_v10, %v200_v39 }
 0x2ad   :  { %205 = vst [vmem:[#allocation8 + $0x8] sm:$0xff] %v203_v40 }
 0x2ae   :  { %218 = dma.vmem_to_hbm [thread:$0]  %s211_s27, 256, %s213_s30, [#allocation4], %s362_s20, %s362_s20, %s363_s21  }
 0x2af   :  { %359 = dma.done.wait [#allocation4], 256  }
 0x2b0   :  { %360 = vsyncadd [#allocation4], 4294967040 }
 0x2b1   :  { %223 = vsyncpa [#allocation3], 1 }
 0x2b2   :  { %224 = vsyncpa [#allocation6], 1 }
 0x2b3   :  { %225 = vsyncpa [#allocation4], 1 }

</bundles_post_ra>
